<compile_context>
chip_gen: v7x
topology: tpu7x:2x2x1
jax: 0.10.0
libtpu: 0.0.40
codegen_flags: <defaults>
</compile_context>

<pallas_src>
import math

import jax
import jax.numpy as jnp
from jax import lax
from jax.experimental import pallas as pl
from jax.experimental.pallas import tpu as pltpu


def _softmax_last(s, approx=True):
    s = s - jnp.max(s, axis=-1, keepdims=True)
    e = jnp.exp(s)
    return e * pl.reciprocal(jnp.sum(e, axis=-1, keepdims=True), approx=approx)


# ----------------------------------------------------------------------------
# Fused kernel: GSAM x2 + GSTAM x2 + SSFM restore + stream sum + FC head.
# ----------------------------------------------------------------------------
def hygstan_kernel(x1_ref, x2_ref, wqkv_ref, wo_ref, uq_ref, ukv_ref, uo_ref,
                   gamma_ref, beta_ref, w0_ref, w1_ref, fcb_ref, out_ref):
    B, S, N = x1_ref.shape
    d = wo_ref.shape[0]
    G = 2 * B                                       # both temporal streams
    scale = 1.0 / math.sqrt(d)

    # torch's x.transpose(1, 2), done once in VMEM: (G, S, N) -> (G, N, S).
    x_sn = jnp.concatenate([x1_ref[...], x2_ref[...]], axis=0)
    x_ns = jnp.transpose(x_sn, (0, 2, 1))
    rows = x_ns.reshape(G * N, S)                   # streams x batch x patches

    # -------- GSAM (shared weights, both streams, fused QKV) ----------------
    qkv = jnp.dot(rows, wqkv_ref[...],
                  preferred_element_type=jnp.float32).reshape(G, N, 3 * d)
    q = qkv[:, :, :d]
    k = qkv[:, :, d:2 * d]
    v = qkv[:, :, 2 * d:]

    s = lax.dot_general(q, k, (((2,), (2,)), ((0,), (0,))),
                        preferred_element_type=jnp.float32) * scale  # (G,N,N)
    z = lax.dot_general(_softmax_last(s), v, (((2,), (1,)), ((0,), (0,))),
                        preferred_element_type=jnp.float32)          # (G,N,d)

    # Residual.  wo's dropped-band columns are zero, so the p dropped spectral
    # bands pass through unchanged (the SSFM restore path is implicit).
    x12 = x_ns + jnp.dot(z.reshape(G * N, d), wo_ref[...],
                         preferred_element_type=jnp.float32).reshape(G, N, S)

    # -------- GSTAM (contexts swapped between the two streams) --------------
    z_sw = jnp.concatenate([z[B:], z[:B]], axis=0)  # stream1 <-> stream2
    q2 = jnp.dot(x12.reshape(G * N, S), uq_ref[...],
                 preferred_element_type=jnp.float32).reshape(G, N, d)
    kv2 = jnp.dot(z_sw.reshape(G * N, d), ukv_ref[...],
                  preferred_element_type=jnp.float32).reshape(G, N, 2 * d)
    k2 = kv2[:, :, :d]
    v2 = kv2[:, :, d:]

    s2 = lax.dot_general(q2, k2, (((2,), (2,)), ((0,), (0,))),
                         preferred_element_type=jnp.float32) * scale
    z2 = lax.dot_general(_softmax_last(s2), v2, (((2,), (1,)), ((0,), (0,))),
                         preferred_element_type=jnp.float32)         # (G,N,d)

    src = x12 + jnp.dot(z2.reshape(G * N, d), uo_ref[...],
                        preferred_element_type=jnp.float32).reshape(G, N, S)

    # -------- sum the two temporal streams (restore already applied) --------
    summed = src[:B] + src[B:]                      # (B, N, S)

    # -------- head: BatchNorm1d (training batch stats) + LeakyReLU ----------
    mean = jnp.mean(summed, axis=0, keepdims=True)
    var = jnp.mean((summed - mean) ** 2, axis=0, keepdims=True)  # biased (torch BN)
    h = (summed - mean) * lax.rsqrt(var + 1e-5) * gamma_ref[...] + beta_ref[...]
    h = jnp.where(h >= 0.0, h, 0.01 * h)            # LeakyReLU(0.01)

    # Linear(F, 2): per-class weights were pre-laid-out as (N, S), so the
    # contraction needs no in-kernel flatten or activation transpose.
    l0 = jnp.sum(jnp.sum(h * w0_ref[...], axis=2), axis=1, keepdims=True)  # (B,1)
    l1 = jnp.sum(jnp.sum(h * w1_ref[...], axis=2), axis=1, keepdims=True)  # (B,1)
    logits = jnp.concatenate([l0, l1], axis=1) + fcb_ref[...]              # (B,2)
    out_ref[...] = _softmax_last(logits, approx=False)


# ----------------------------------------------------------------------------
# Wrapper: weight-only fusing / padding / re-layout, then one pallas_call.
# ----------------------------------------------------------------------------
def hygstan_forward(params, x1, x2, p):
    B, S, N = x1.shape
    M = S - p
    d = params["wq"].shape[1]
    f32 = jnp.float32

    pad_r = jnp.zeros((S - M, d), f32)   # zero rows for the dropped bands
    pad_c = jnp.zeros((d, S - M), f32)   # zero cols for the dropped bands

    # Fused QKV + zero-padding of the dropped p spectral bands: makes the SSFM
    # compress (x[..., :M]) and restore (concat with dropped bands) implicit in
    # the kernel and keeps every contraction width at the aligned S.
    wqkv = jnp.concatenate(
        [jnp.concatenate([params["wq"], pad_r], axis=0),
         jnp.concatenate([params["wk"], pad_r], axis=0),
         jnp.concatenate([params["wv"], pad_r], axis=0)], axis=1)    # (S, 3d)
    wo_p = jnp.concatenate([params["wo"], pad_c], axis=1)            # (d, S)
    uq_p = jnp.concatenate([params["uq"], pad_r], axis=0)            # (S, d)
    ukv = jnp.concatenate([params["uk"], params["uv"]], axis=1)      # (d, 2d)
    uo_p = jnp.concatenate([params["uo"], pad_c], axis=1)            # (d, S)

    # Head params re-laid to the kernel's patch-major (N, S) layout.  The torch
    # model flattens (B, S, N) -> feature index f = s*N + n, so permuting the
    # per-feature params here keeps the math identical while letting the kernel
    # skip the final activation transpose/flatten.
    gamma = params["bn_gamma"].reshape(S, N).T                        # (N, S)
    beta = params["bn_beta"].reshape(S, N).T                          # (N, S)
    w_head = params["fc_w"].reshape(S, N, 2)
    w0 = w_head[:, :, 0].T                                            # (N, S)
    w1 = w_head[:, :, 1].T                                            # (N, S)

    return pl.pallas_call(
        hygstan_kernel,
        out_shape=jax.ShapeDtypeStruct((B, 2), f32),
        compiler_params=pltpu.CompilerParams(
            vmem_limit_bytes=32 * 1024 * 1024),  # explicit budget; tiny today
    )(x1, x2, wqkv, wo_p, uq_p, ukv, uo_p, gamma, beta, w0, w1, params["fc_b"])


def init_params(key, S, N, p, d):
    M = S - p
    F = N * S
    ks = jax.random.split(key, 10)
    sc = lambda fan: 1.0 / math.sqrt(fan)
    return dict(
        wq=jax.random.normal(ks[0], (M, d), jnp.float32) * sc(M),
        wk=jax.random.normal(ks[1], (M, d), jnp.float32) * sc(M),
        wv=jax.random.normal(ks[2], (M, d), jnp.float32) * sc(M),
        wo=jax.random.normal(ks[3], (d, M), jnp.float32) * sc(d),
        uq=jax.random.normal(ks[4], (M, d), jnp.float32) * sc(M),
        uk=jax.random.normal(ks[5], (d, d), jnp.float32) * sc(d),
        uv=jax.random.normal(ks[6], (d, d), jnp.float32) * sc(d),
        uo=jax.random.normal(ks[7], (d, M), jnp.float32) * sc(d),
        bn_gamma=jnp.ones((1, F), jnp.float32),
        bn_beta=jnp.zeros((1, F), jnp.float32),
        fc_w=jax.random.normal(ks[8], (F, 2), jnp.float32) * sc(F),
        fc_b=jax.random.normal(ks[9], (1, 2), jnp.float32) * sc(F),
    )


if __name__ == "__main__":
    B, num_patches, image_size, p, d = 2, 8, 8, 13, 32
    S = image_size ** 2                      # 64
    key = jax.random.PRNGKey(0)
    k1, k2, kp = jax.random.split(key, 3)
    x1 = jax.random.normal(k1, (B, S, num_patches), jnp.float32)
    x2 = jax.random.normal(k2, (B, S, num_patches), jnp.float32)
    params = init_params(kp, S, num_patches, p, d)

    fwd = jax.jit(hygstan_forward, static_argnames=("p",))
    out = fwd(params, x1, x2, p=p)
    out = jax.block_until_ready(out)
    assert out.shape == (B, 2)
    assert bool(jnp.all(jnp.isfinite(out)))
    assert bool(jnp.allclose(jnp.sum(out, axis=-1), 1.0, atol=1e-5))
    print("KERNEL_OK")
</pallas_src>

<mosaic_0001>
module attributes {stable_mosaic.version = 11 : i64} {
  func.func @hygstan_kernel(%arg0: memref<2x64x8xf32, #tpu.memory_space<vmem>>, %arg1: memref<2x64x8xf32, #tpu.memory_space<vmem>>, %arg2: memref<64x96xf32, #tpu.memory_space<vmem>>, %arg3: memref<32x64xf32, #tpu.memory_space<vmem>>, %arg4: memref<64x32xf32, #tpu.memory_space<vmem>>, %arg5: memref<32x64xf32, #tpu.memory_space<vmem>>, %arg6: memref<32x64xf32, #tpu.memory_space<vmem>>, %arg7: memref<8x64xf32, #tpu.memory_space<vmem>>, %arg8: memref<8x64xf32, #tpu.memory_space<vmem>>, %arg9: memref<8x64xf32, #tpu.memory_space<vmem>>, %arg10: memref<8x64xf32, #tpu.memory_space<vmem>>, %arg11: memref<1x2xf32, #tpu.memory_space<vmem>>, %arg12: memref<2x2xf32, #tpu.memory_space<vmem>>) attributes {dimension_semantics = [], scalar_prefetch = 0 : i64, scratch_operands = 0 : i64, tpu.core_type = #tpu.core_type<tc>} {
    %c0 = arith.constant 0 : index
    %c0_0 = arith.constant 0 : index
    %c0_1 = arith.constant 0 : index
    %0 = vector.load %arg0[%c0, %c0_0, %c0_1] : memref<2x64x8xf32, #tpu.memory_space<vmem>>, vector<2x64x8xf32>
    %c0_2 = arith.constant 0 : index
    %c0_3 = arith.constant 0 : index
    %c0_4 = arith.constant 0 : index
    %1 = vector.load %arg1[%c0_2, %c0_3, %c0_4] : memref<2x64x8xf32, #tpu.memory_space<vmem>>, vector<2x64x8xf32>
    %2 = tpu.concatenate %0, %1 in 0 : vector<2x64x8xf32>, vector<2x64x8xf32> -> vector<4x64x8xf32>
    %3 = tpu.transpose %2, [0, 2, 1] : vector<4x64x8xf32> -> vector<4x8x64xf32>
    %4 = vector.shape_cast %3 : vector<4x8x64xf32> to vector<32x64xf32>
    %c0_5 = arith.constant 0 : index
    %c0_6 = arith.constant 0 : index
    %5 = vector.load %arg2[%c0_5, %c0_6] : memref<64x96xf32, #tpu.memory_space<vmem>>, vector<64x96xf32>
    %cst = arith.constant dense<0.000000e+00> : vector<32x96xf32>
    %6 = tpu.matmul %4, %5, %cst {dimension_numbers = #tpu.dot_dimension_numbers<[1], [0], [0], [1], [0, 0, 1, 1], [], []>} : vector<32x64xf32>, vector<64x96xf32>, vector<32x96xf32> -> vector<32x96xf32>
    %7 = vector.shape_cast %6 : vector<32x96xf32> to vector<4x8x96xf32>
    %8 = vector.extract_strided_slice %7 {offsets = [0, 0, 0], sizes = [4, 8, 32], strides = [1, 1, 1]} : vector<4x8x96xf32> to vector<4x8x32xf32>
    %9 = vector.extract_strided_slice %7 {offsets = [0, 0, 32], sizes = [4, 8, 32], strides = [1, 1, 1]} : vector<4x8x96xf32> to vector<4x8x32xf32>
    %10 = vector.extract_strided_slice %7 {offsets = [0, 0, 64], sizes = [4, 8, 32], strides = [1, 1, 1]} : vector<4x8x96xf32> to vector<4x8x32xf32>
    %cst_7 = arith.constant dense<0.000000e+00> : vector<4x8x8xf32>
    %11 = tpu.matmul %8, %9, %cst_7 {dimension_numbers = #tpu.dot_dimension_numbers<[2], [2], [1], [1], [0, 0, 0, 1, 1, 1], [0], [0]>} : vector<4x8x32xf32>, vector<4x8x32xf32>, vector<4x8x8xf32> -> vector<4x8x8xf32>
    %cst_8 = arith.constant 0.176776692 : f32
    %12 = vector.broadcast %cst_8 : f32 to vector<4x8x8xf32>
    %13 = arith.mulf %11, %12 : vector<4x8x8xf32>
    %cst_9 = arith.constant dense<0xFF800000> : vector<4x8xf32>
    %14 = vector.multi_reduction <maximumf>, %13, %cst_9 [2] : vector<4x8x8xf32> to vector<4x8xf32>
    %15 = vector.shape_cast %14 : vector<4x8xf32> to vector<4x8x1xf32>
    %16 = vector.broadcast %15 : vector<4x8x1xf32> to vector<4x8x8xf32>
    %17 = arith.subf %13, %16 : vector<4x8x8xf32>
    %18 = math.exp %17 : vector<4x8x8xf32>
    %cst_10 = arith.constant dense<0.000000e+00> : vector<4x8xf32>
    %19 = vector.multi_reduction <add>, %18, %cst_10 [2] : vector<4x8x8xf32> to vector<4x8xf32>
    %20 = vector.shape_cast %19 : vector<4x8xf32> to vector<4x8x1xf32>
    %21 = tpu.reciprocal %20 {approx = true} : vector<4x8x1xf32> -> vector<4x8x1xf32>
    %22 = vector.broadcast %21 : vector<4x8x1xf32> to vector<4x8x8xf32>
    %23 = arith.mulf %18, %22 : vector<4x8x8xf32>
    %cst_11 = arith.constant dense<0.000000e+00> : vector<4x8x32xf32>
    %24 = tpu.matmul %23, %10, %cst_11 {dimension_numbers = #tpu.dot_dimension_numbers<[2], [1], [1], [2], [0, 0, 0, 1, 1, 2], [0], [0]>} : vector<4x8x8xf32>, vector<4x8x32xf32>, vector<4x8x32xf32> -> vector<4x8x32xf32>
    %25 = vector.shape_cast %24 : vector<4x8x32xf32> to vector<32x32xf32>
    %c0_12 = arith.constant 0 : index
    %c0_13 = arith.constant 0 : index
    %26 = vector.load %arg3[%c0_12, %c0_13] : memref<32x64xf32, #tpu.memory_space<vmem>>, vector<32x64xf32>
    %cst_14 = arith.constant dense<0.000000e+00> : vector<32x64xf32>
    %27 = tpu.matmul %25, %26, %cst_14 {dimension_numbers = #tpu.dot_dimension_numbers<[1], [0], [0], [1], [0, 0, 1, 1], [], []>} : vector<32x32xf32>, vector<32x64xf32>, vector<32x64xf32> -> vector<32x64xf32>
    %28 = vector.shape_cast %27 : vector<32x64xf32> to vector<4x8x64xf32>
    %29 = arith.addf %3, %28 : vector<4x8x64xf32>
    %30 = vector.extract_strided_slice %24 {offsets = [2, 0, 0], sizes = [2, 8, 32], strides = [1, 1, 1]} : vector<4x8x32xf32> to vector<2x8x32xf32>
    %31 = vector.extract_strided_slice %24 {offsets = [0, 0, 0], sizes = [2, 8, 32], strides = [1, 1, 1]} : vector<4x8x32xf32> to vector<2x8x32xf32>
    %32 = tpu.concatenate %30, %31 in 0 : vector<2x8x32xf32>, vector<2x8x32xf32> -> vector<4x8x32xf32>
    %33 = vector.shape_cast %29 : vector<4x8x64xf32> to vector<32x64xf32>
    %c0_15 = arith.constant 0 : index
    %c0_16 = arith.constant 0 : index
    %34 = vector.load %arg4[%c0_15, %c0_16] : memref<64x32xf32, #tpu.memory_space<vmem>>, vector<64x32xf32>
    %cst_17 = arith.constant dense<0.000000e+00> : vector<32x32xf32>
    %35 = tpu.matmul %33, %34, %cst_17 {dimension_numbers = #tpu.dot_dimension_numbers<[1], [0], [0], [1], [0, 0, 1, 1], [], []>} : vector<32x64xf32>, vector<64x32xf32>, vector<32x32xf32> -> vector<32x32xf32>
    %36 = vector.shape_cast %35 : vector<32x32xf32> to vector<4x8x32xf32>
    %37 = vector.shape_cast %32 : vector<4x8x32xf32> to vector<32x32xf32>
    %c0_18 = arith.constant 0 : index
    %c0_19 = arith.constant 0 : index
    %38 = vector.load %arg5[%c0_18, %c0_19] : memref<32x64xf32, #tpu.memory_space<vmem>>, vector<32x64xf32>
    %cst_20 = arith.constant dense<0.000000e+00> : vector<32x64xf32>
    %39 = tpu.matmul %37, %38, %cst_20 {dimension_numbers = #tpu.dot_dimension_numbers<[1], [0], [0], [1], [0, 0, 1, 1], [], []>} : vector<32x32xf32>, vector<32x64xf32>, vector<32x64xf32> -> vector<32x64xf32>
    %40 = vector.shape_cast %39 : vector<32x64xf32> to vector<4x8x64xf32>
    %41 = vector.extract_strided_slice %40 {offsets = [0, 0, 0], sizes = [4, 8, 32], strides = [1, 1, 1]} : vector<4x8x64xf32> to vector<4x8x32xf32>
    %42 = vector.extract_strided_slice %40 {offsets = [0, 0, 32], sizes = [4, 8, 32], strides = [1, 1, 1]} : vector<4x8x64xf32> to vector<4x8x32xf32>
    %cst_21 = arith.constant dense<0.000000e+00> : vector<4x8x8xf32>
    %43 = tpu.matmul %36, %41, %cst_21 {dimension_numbers = #tpu.dot_dimension_numbers<[2], [2], [1], [1], [0, 0, 0, 1, 1, 1], [0], [0]>} : vector<4x8x32xf32>, vector<4x8x32xf32>, vector<4x8x8xf32> -> vector<4x8x8xf32>
    %cst_22 = arith.constant 0.176776692 : f32
    %44 = vector.broadcast %cst_22 : f32 to vector<4x8x8xf32>
    %45 = arith.mulf %43, %44 : vector<4x8x8xf32>
    %cst_23 = arith.constant dense<0xFF800000> : vector<4x8xf32>
    %46 = vector.multi_reduction <maximumf>, %45, %cst_23 [2] : vector<4x8x8xf32> to vector<4x8xf32>
    %47 = vector.shape_cast %46 : vector<4x8xf32> to vector<4x8x1xf32>
    %48 = vector.broadcast %47 : vector<4x8x1xf32> to vector<4x8x8xf32>
    %49 = arith.subf %45, %48 : vector<4x8x8xf32>
    %50 = math.exp %49 : vector<4x8x8xf32>
    %cst_24 = arith.constant dense<0.000000e+00> : vector<4x8xf32>
    %51 = vector.multi_reduction <add>, %50, %cst_24 [2] : vector<4x8x8xf32> to vector<4x8xf32>
    %52 = vector.shape_cast %51 : vector<4x8xf32> to vector<4x8x1xf32>
    %53 = tpu.reciprocal %52 {approx = true} : vector<4x8x1xf32> -> vector<4x8x1xf32>
    %54 = vector.broadcast %53 : vector<4x8x1xf32> to vector<4x8x8xf32>
    %55 = arith.mulf %50, %54 : vector<4x8x8xf32>
    %cst_25 = arith.constant dense<0.000000e+00> : vector<4x8x32xf32>
    %56 = tpu.matmul %55, %42, %cst_25 {dimension_numbers = #tpu.dot_dimension_numbers<[2], [1], [1], [2], [0, 0, 0, 1, 1, 2], [0], [0]>} : vector<4x8x8xf32>, vector<4x8x32xf32>, vector<4x8x32xf32> -> vector<4x8x32xf32>
    %57 = vector.shape_cast %56 : vector<4x8x32xf32> to vector<32x32xf32>
    %c0_26 = arith.constant 0 : index
    %c0_27 = arith.constant 0 : index
    %58 = vector.load %arg6[%c0_26, %c0_27] : memref<32x64xf32, #tpu.memory_space<vmem>>, vector<32x64xf32>
    %cst_28 = arith.constant dense<0.000000e+00> : vector<32x64xf32>
    %59 = tpu.matmul %57, %58, %cst_28 {dimension_numbers = #tpu.dot_dimension_numbers<[1], [0], [0], [1], [0, 0, 1, 1], [], []>} : vector<32x32xf32>, vector<32x64xf32>, vector<32x64xf32> -> vector<32x64xf32>
    %60 = vector.shape_cast %59 : vector<32x64xf32> to vector<4x8x64xf32>
    %61 = arith.addf %29, %60 : vector<4x8x64xf32>
    %62 = vector.extract_strided_slice %61 {offsets = [0, 0, 0], sizes = [2, 8, 64], strides = [1, 1, 1]} : vector<4x8x64xf32> to vector<2x8x64xf32>
    %63 = vector.extract_strided_slice %61 {offsets = [2, 0, 0], sizes = [2, 8, 64], strides = [1, 1, 1]} : vector<4x8x64xf32> to vector<2x8x64xf32>
    %64 = arith.addf %62, %63 : vector<2x8x64xf32>
    %cst_29 = arith.constant dense<0.000000e+00> : vector<8x64xf32>
    %65 = vector.multi_reduction <add>, %64, %cst_29 [0] : vector<2x8x64xf32> to vector<8x64xf32>
    %66 = vector.shape_cast %65 : vector<8x64xf32> to vector<1x8x64xf32>
    %cst_30 = arith.constant 2.000000e+00 : f32
    %67 = vector.broadcast %cst_30 : f32 to vector<1x8x64xf32>
    %68 = arith.divf %66, %67 : vector<1x8x64xf32>
    %69 = vector.broadcast %68 : vector<1x8x64xf32> to vector<2x8x64xf32>
    %70 = arith.subf %64, %69 : vector<2x8x64xf32>
    %71 = arith.mulf %70, %70 : vector<2x8x64xf32>
    %cst_31 = arith.constant dense<0.000000e+00> : vector<8x64xf32>
    %72 = vector.multi_reduction <add>, %71, %cst_31 [0] : vector<2x8x64xf32> to vector<8x64xf32>
    %73 = vector.shape_cast %72 : vector<8x64xf32> to vector<1x8x64xf32>
    %cst_32 = arith.constant 2.000000e+00 : f32
    %74 = vector.broadcast %cst_32 : f32 to vector<1x8x64xf32>
    %75 = arith.divf %73, %74 : vector<1x8x64xf32>
    %76 = vector.broadcast %68 : vector<1x8x64xf32> to vector<2x8x64xf32>
    %77 = arith.subf %64, %76 : vector<2x8x64xf32>
    %cst_33 = arith.constant 9.99999974E-6 : f32
    %78 = vector.broadcast %cst_33 : f32 to vector<1x8x64xf32>
    %79 = arith.addf %75, %78 : vector<1x8x64xf32>
    %80 = math.rsqrt %79 : vector<1x8x64xf32>
    %81 = vector.broadcast %80 : vector<1x8x64xf32> to vector<2x8x64xf32>
    %82 = arith.mulf %77, %81 : vector<2x8x64xf32>
    %c0_34 = arith.constant 0 : index
    %c0_35 = arith.constant 0 : index
    %83 = vector.load %arg7[%c0_34, %c0_35] : memref<8x64xf32, #tpu.memory_space<vmem>>, vector<8x64xf32>
    %84 = vector.shape_cast %83 : vector<8x64xf32> to vector<1x8x64xf32>
    %85 = vector.broadcast %84 : vector<1x8x64xf32> to vector<2x8x64xf32>
    %86 = arith.mulf %82, %85 : vector<2x8x64xf32>
    %c0_36 = arith.constant 0 : index
    %c0_37 = arith.constant 0 : index
    %87 = vector.load %arg8[%c0_36, %c0_37] : memref<8x64xf32, #tpu.memory_space<vmem>>, vector<8x64xf32>
    %88 = vector.shape_cast %87 : vector<8x64xf32> to vector<1x8x64xf32>
    %89 = vector.broadcast %88 : vector<1x8x64xf32> to vector<2x8x64xf32>
    %90 = arith.addf %86, %89 : vector<2x8x64xf32>
    %cst_38 = arith.constant 0.000000e+00 : f32
    %91 = vector.broadcast %cst_38 : f32 to vector<2x8x64xf32>
    %92 = arith.cmpf oge, %90, %91 : vector<2x8x64xf32>
    %cst_39 = arith.constant 0.00999999977 : f32
    %93 = vector.broadcast %cst_39 : f32 to vector<2x8x64xf32>
    %94 = arith.mulf %93, %90 : vector<2x8x64xf32>
    %95 = arith.select %92, %90, %94 : vector<2x8x64xi1>, vector<2x8x64xf32>
    %c0_40 = arith.constant 0 : index
    %c0_41 = arith.constant 0 : index
    %96 = vector.load %arg9[%c0_40, %c0_41] : memref<8x64xf32, #tpu.memory_space<vmem>>, vector<8x64xf32>
    %97 = vector.shape_cast %96 : vector<8x64xf32> to vector<1x8x64xf32>
    %98 = vector.broadcast %97 : vector<1x8x64xf32> to vector<2x8x64xf32>
    %99 = arith.mulf %95, %98 : vector<2x8x64xf32>
    %cst_42 = arith.constant dense<0.000000e+00> : vector<2x8xf32>
    %100 = vector.multi_reduction <add>, %99, %cst_42 [2] : vector<2x8x64xf32> to vector<2x8xf32>
    %cst_43 = arith.constant dense<0.000000e+00> : vector<2xf32>
    %101 = vector.multi_reduction <add>, %100, %cst_43 [1] : vector<2x8xf32> to vector<2xf32>
    %102 = vector.shape_cast %101 : vector<2xf32> to vector<2x1xf32>
    %c0_44 = arith.constant 0 : index
    %c0_45 = arith.constant 0 : index
    %103 = vector.load %arg10[%c0_44, %c0_45] : memref<8x64xf32, #tpu.memory_space<vmem>>, vector<8x64xf32>
    %104 = vector.shape_cast %103 : vector<8x64xf32> to vector<1x8x64xf32>
    %105 = vector.broadcast %104 : vector<1x8x64xf32> to vector<2x8x64xf32>
    %106 = arith.mulf %95, %105 : vector<2x8x64xf32>
    %cst_46 = arith.constant dense<0.000000e+00> : vector<2x8xf32>
    %107 = vector.multi_reduction <add>, %106, %cst_46 [2] : vector<2x8x64xf32> to vector<2x8xf32>
    %cst_47 = arith.constant dense<0.000000e+00> : vector<2xf32>
    %108 = vector.multi_reduction <add>, %107, %cst_47 [1] : vector<2x8xf32> to vector<2xf32>
    %109 = vector.shape_cast %108 : vector<2xf32> to vector<2x1xf32>
    %110 = tpu.concatenate %102, %109 in 1 : vector<2x1xf32>, vector<2x1xf32> -> vector<2x2xf32>
    %c0_48 = arith.constant 0 : index
    %c0_49 = arith.constant 0 : index
    %111 = vector.load %arg11[%c0_48, %c0_49] : memref<1x2xf32, #tpu.memory_space<vmem>>, vector<1x2xf32>
    %112 = vector.broadcast %111 : vector<1x2xf32> to vector<2x2xf32>
    %113 = arith.addf %110, %112 : vector<2x2xf32>
    %cst_50 = arith.constant dense<0xFF800000> : vector<2xf32>
    %114 = vector.multi_reduction <maximumf>, %113, %cst_50 [1] : vector<2x2xf32> to vector<2xf32>
    %115 = vector.shape_cast %114 : vector<2xf32> to vector<2x1xf32>
    %116 = vector.broadcast %115 : vector<2x1xf32> to vector<2x2xf32>
    %117 = arith.subf %113, %116 : vector<2x2xf32>
    %118 = math.exp %117 : vector<2x2xf32>
    %cst_51 = arith.constant dense<0.000000e+00> : vector<2xf32>
    %119 = vector.multi_reduction <add>, %118, %cst_51 [1] : vector<2x2xf32> to vector<2xf32>
    %120 = vector.shape_cast %119 : vector<2xf32> to vector<2x1xf32>
    %121 = tpu.reciprocal %120 : vector<2x1xf32> -> vector<2x1xf32>
    %122 = vector.broadcast %121 : vector<2x1xf32> to vector<2x2xf32>
    %123 = arith.mulf %118, %122 : vector<2x2xf32>
    %c0_52 = arith.constant 0 : index
    %c0_53 = arith.constant 0 : index
    %124 = vector.load %arg12[%c0_52, %c0_53] : memref<2x2xf32, #tpu.memory_space<vmem>>, vector<2x2xf32>
    tpu.vector_store %arg12[%c0_52, %c0_53], %123 {strides = array<i32>} : memref<2x2xf32, #tpu.memory_space<vmem>>, vector<2x2xf32>,
    return
  }
}

</mosaic_0001>

<bundles_post_ra>
// kernel: hygstan_forward.1
= control target key start
LH: loop header
LB: loop body
LE: loop exit
PB: predicated region body
PF: predicated region fallthrough
CT: control target
= control target key end

     0   :  { %s3018_s0 = inlined_call_operand.vmem [shape: f32[2,64,8], index: 0, kind: input, shape index: {}]   ;;  %s3019_s1 = inlined_call_operand.vmem [shape: f32[2,64,8], index: 1, kind: input, shape index: {}]   ;;  %s3020_s2 = inlined_call_operand.vmem [shape: f32[64,96], index: 2, kind: input, shape index: {}]   ;;  %s3021_s3 = inlined_call_operand.vmem [shape: f32[32,64], index: 3, kind: input, shape index: {}]   ;;  %s3022_s4 = inlined_call_operand.vmem [shape: f32[64,32], index: 4, kind: input, shape index: {}]   ;;  %s3023_s5 = inlined_call_operand.vmem [shape: f32[32,64], index: 5, kind: input, shape index: {}]   ;;  %s3024_s6 = inlined_call_operand.vmem [shape: f32[32,64], index: 6, kind: input, shape index: {}]   ;;  %s3025_s7 = inlined_call_operand.vmem [shape: f32[8,64], index: 7, kind: input, shape index: {}]   ;;  %s3026_s8 = inlined_call_operand.vmem [shape: f32[8,64], index: 8, kind: input, shape index: {}]   ;;  %s3027_s9 = inlined_call_operand.vmem [shape: f32[8,64], index: 9, kind: input, shape index: {}]   ;;  %s3028_s10 = inlined_call_operand.vmem [shape: f32[8,64], index: 10, kind: input, shape index: {}]   ;;  %s3029_s11 = inlined_call_operand.vmem [shape: f32[1,2], index: 11, kind: input, shape index: {}]   ;;  %s3030_s12 = inlined_call_operand.hbm [shape: f32[2,2], index: 12, kind: output, shape index: {}]  }
   0x1   :  { %v42_v0 = vld [vmem:[%s3018_s0] sm:$0xff]  ;;  %v43_v2 = vld [vmem:[%s3018_s0 + $0x8] sm:$0xff]  ;;  %v44_v4 = vld [vmem:[%s3018_s0 + $0x10] sm:$0xff] }
   0x2   :  { %v50_v1 = vld [vmem:[%s3018_s0 + $0x40] sm:$0xff]  ;;  %74 = vxpose.xlu0.b32.start [1/8] (short) (narrow) %v42_v0, 8  ;;  %v51_v3 = vld [vmem:[%s3018_s0 + $0x48] sm:$0xff]  ;;  %v52_v5 = vld [vmem:[%s3018_s0 + $0x50] sm:$0xff] }
   0x3   :  { %106 = vxpose.xlu1.b32.start [1/8] (short) (narrow) %v50_v1, 8  ;;  %v45_v6 = vld [vmem:[%s3018_s0 + $0x18] sm:$0xff]  ;;  %v202_v8 = vld [vmem:[%s3020_s2] sm:$0xff]  ;;  %v203_v9 = vld [vmem:[%s3020_s2 + $0x8] sm:$0xff] }
   0x4   :  { %v53_v7 = vld [vmem:[%s3018_s0 + $0x58] sm:$0xff]  ;;  %v204_v10 = vld [vmem:[%s3020_s2 + $0x10] sm:$0xff]  ;;  %v2441_v12 = vpack.c.bf16 %v203_v9, %v202_v8  ;;  %v206_v14 = vld [vmem:[%s3020_s2 + $0x20] sm:$0xff] }
   0x5   :  { %v205_v11 = vld [vmem:[%s3020_s2 + $0x18] sm:$0xff]  ;;  %v207_v15 = vld [vmem:[%s3020_s2 + $0x28] sm:$0xff] }
   0x6   :  { %75 = vxpose.xlu0.b32.cont [2/8] (short) (narrow) %v43_v2, 8  ;;  %v2445_v13 = vpack.c.bf16 %v205_v11, %v204_v10 }
   0x7   :  { %107 = vxpose.xlu1.b32.cont [2/8] (short) (narrow) %v51_v3, 8 }
   0xa   :  { %76 = vxpose.xlu0.b32.cont [3/8] (short) (narrow) %v44_v4, 8 }
   0xb   :  { %108 = vxpose.xlu1.b32.cont [3/8] (short) (narrow) %v52_v5, 8 }
   0xe   :  { %77 = vxpose.xlu0.b32.cont [4/8] (short) (narrow) %v45_v6, 8 }
   0xf   :  { %109 = vxpose.xlu1.b32.cont [4/8] (short) (narrow) %v53_v7, 8 }
  0x10   :  { %17 = vsyncpa [#allocation3], 0  ;;  %v46_v16 = vld [vmem:[%s3018_s0 + $0x20] sm:$0xff]  ;;  %2442 = vmatprep.subr.bf16.mxu0 %v2441_v12  ;;  %v2449_v18 = vpack.c.bf16 %v207_v15, %v206_v14  ;;  %v208_v19 = vld [vmem:[%s3020_s2 + $0x30] sm:$0xff]  ;;  %vm210_vm0 = vcmask 523264   ;;  %v2570_v48 = vmov 0.0  }
  0x11   :  { %v54_v17 = vld [vmem:[%s3018_s0 + $0x60] sm:$0xff]  ;;  %2444 = vmatpush3.bf16.msra.mxu0 %v2441_v12  ;;  %v209_v20 = vld [vmem:[%s3020_s2 + $0x38] sm:$0xff]  ;;  %v47_v21 = vld [vmem:[%s3018_s0 + $0x28] sm:$0xff]  ;;  %2302 = vmatprep.subr.mxu1 %v2570_v48  ;;  %vm2571_vm1 = vmmov 0   ;;  %vm311_vm2 = vcmask 261120   ;;  %vm621_vm3 = vcmask 64512  }
  0x12   :  { %2446 = vmatprep.subr.bf16.mxu0 %v2445_v13  ;;  %78 = vxpose.xlu0.b32.cont [5/8] (short) (narrow) %v46_v16, 8  ;;  %v55_v22 = vld [vmem:[%s3018_s0 + $0x68] sm:$0xff]  ;;  %v2453_v23 = vpack.c.bf16 %v209_v20, %v208_v19  ;;  %v48_v24 = vld [vmem:[%s3018_s0 + $0x30] sm:$0xff]  ;;  %v49_v26 = vld [vmem:[%s3018_s0 + $0x38] sm:$0xff]  ;;  %s2573_s25 = smov 64   ;;  %vm2082_vm6 = vcmask 1041409  }
  0x13   :  { %110 = vxpose.xlu1.b32.cont [5/8] (short) (narrow) %v54_v17, 8  ;;  %v56_v25 = vld [vmem:[%s3018_s0 + $0x70] sm:$0xff]  ;;  %v57_v27 = vld [vmem:[%s3018_s0 + $0x78] sm:$0xff]  ;;  %v58_v28 = vld [vmem:[%s3019_s1] sm:$0xff]  ;;  %2304 = vmatprep.mubr.msk.f32.mxu1 %vm2571_vm1, %v2570_v48  ;;  %vm2085_vm7 = vcmask 58368   ;;  %vm2113_vm8 = vcmask 7168  }
  0x14   :  { %v66_v29 = vld [vmem:[%s3019_s1 + $0x40] sm:$0xff]  ;;  %v59_v30 = vld [vmem:[%s3019_s1 + $0x8] sm:$0xff]  ;;  %v60_v32 = vld [vmem:[%s3019_s1 + $0x10] sm:$0xff]  ;;  %vm2123_vm9 = vcmask 9216  }
  0x15   :  { %2448 = vmatpush3.bf16.msra.mxu0 %v2445_v13  ;;  %v67_v31 = vld [vmem:[%s3019_s1 + $0x48] sm:$0xff]  ;;  %v68_v33 = vld [vmem:[%s3019_s1 + $0x50] sm:$0xff]  ;;  %v61_v34 = vld [vmem:[%s3019_s1 + $0x18] sm:$0xff] }
  0x16   :  { %2450 = vmatprep.subr.bf16.mxu0 %v2449_v18  ;;  %79 = vxpose.xlu0.b32.cont [6/8] (short) (narrow) %v47_v21, 8  ;;  %v69_v35 = vld [vmem:[%s3019_s1 + $0x58] sm:$0xff]  ;;  %v62_v36 = vld [vmem:[%s3019_s1 + $0x20] sm:$0xff]  ;;  %v63_v38 = vld [vmem:[%s3019_s1 + $0x28] sm:$0xff] }
  0x17   :  { %111 = vxpose.xlu1.b32.cont [6/8] (short) (narrow) %v55_v22, 8  ;;  %v70_v37 = vld [vmem:[%s3019_s1 + $0x60] sm:$0xff]  ;;  %v71_v39 = vld [vmem:[%s3019_s1 + $0x68] sm:$0xff]  ;;  %v64_v40 = vld [vmem:[%s3019_s1 + $0x30] sm:$0xff] }
  0x18   :  { %v72_v41 = vld [vmem:[%s3019_s1 + $0x70] sm:$0xff]  ;;  %v65_v42 = vld [vmem:[%s3019_s1 + $0x38] sm:$0xff] }
  0x19   :  { %2452 = vmatpush3.bf16.msra.mxu0 %v2449_v18  ;;  %v73_v43 = vld [vmem:[%s3019_s1 + $0x78] sm:$0xff]  ;;  %s2572_s1 = smov 96  }
  0x1a   :  { %2454 = vmatprep.subr.bf16.mxu0 %v2453_v23  ;;  %80 = vxpose.xlu0.b32.cont [7/8] (short) (narrow) %v48_v24, 8 }
  0x1b   :  { %112 = vxpose.xlu1.b32.cont [7/8] (short) (narrow) %v56_v25, 8 }
  0x1d   :  { %2456 = vmatpush3.bf16.msra.mxu0 %v2453_v23 }
  0x1e   :  { %81 = vxpose.xlu0.b32.end [8/8] (short) (narrow) %v49_v26, 8  ;;  %2297 = vmatprep.subr.mxu0 %v2570_v48 }
  0x1f   :  { %113 = vxpose.xlu1.b32.end [8/8] (short) (narrow) %v57_v27, 8 }
  0x22   :  { %138 = vxpose.xlu0.b32.start [1/8] (short) (narrow) %v58_v28, 8 }
  0x23   :  { %170 = vxpose.xlu1.b32.start [1/8] (short) (narrow) %v66_v29, 8 }
  0x26   :  { %139 = vxpose.xlu0.b32.cont [2/8] (short) (narrow) %v59_v30, 8 }
  0x27   :  { %171 = vxpose.xlu1.b32.cont [2/8] (short) (narrow) %v67_v31, 8 }
  0x2a   :  { %140 = vxpose.xlu0.b32.cont [3/8] (short) (narrow) %v60_v32, 8 }
  0x2b   :  { %172 = vxpose.xlu1.b32.cont [3/8] (short) (narrow) %v68_v33, 8 }
  0x2e   :  { %141 = vxpose.xlu0.b32.cont [4/8] (short) (narrow) %v61_v34, 8 }
  0x2f   :  { %173 = vxpose.xlu1.b32.cont [4/8] (short) (narrow) %v69_v35, 8 }
  0x32   :  { %142 = vxpose.xlu0.b32.cont [5/8] (short) (narrow) %v62_v36, 8 }
  0x33   :  { %174 = vxpose.xlu1.b32.cont [5/8] (short) (narrow) %v70_v37, 8 }
  0x36   :  { %143 = vxpose.xlu0.b32.cont [6/8] (short) (narrow) %v63_v38, 8  ;;  %v970_v38 = vld [vmem:[%s3021_s3] sm:$0xff] }
  0x37   :  { %175 = vxpose.xlu1.b32.cont [6/8] (short) (narrow) %v71_v39, 8  ;;  %v971_v39 = vld [vmem:[%s3021_s3 + $0x8] sm:$0xff] }
  0x3a   :  { %144 = vxpose.xlu0.b32.cont [7/8] (short) (narrow) %v64_v40, 8 }
  0x3b   :  { %176 = vxpose.xlu1.b32.cont [7/8] (short) (narrow) %v72_v41, 8 }
  0x3e   :  { %145 = vxpose.xlu0.b32.end [8/8] (short) (narrow) %v65_v42, 8  ;;  %v2457_v42 = vpack.c.bf16 %v971_v39, %v970_v38 }
  0x3f   :  { %177 = vxpose.xlu1.b32.end [8/8] (short) (narrow) %v73_v43, 8 }
  0x82   :  { %v2760_v44 = vpop.trf.xlu0 }
  0x83   :  { %v2762_v45 = vpop.trf.xlu1  ;;  %2291 = vmatprep.mubr.msk.f32.mxu0 %vm210_vm0, %v2760_v44 }
  0x84   :  { %2292 = vmatmul.mubr.msk.f32.vlgmr.msra.gmra.mrb[0].mxu0 %vm210_vm0, %v2762_v45 }
  0xa2   :  { %v2768_v46 = vpop.trf.xlu0 }
  0xa3   :  { %v2770_v47 = vpop.trf.xlu1  ;;  %2294 = vmatprep.mubr.msk.f32.mxu0 %vm210_vm0, %v2768_v46 }
  0xa4   :  { %2295 = vmatmul.mubr.msk.f32.gmra.mrb[2].mxu0 %vm210_vm0, %v2770_v47 }
  0xa5   :  { %2299 = vmatprep.mubr.msk.f32.mxu0 %vm2571_vm1, %v2570_v48 }
 0x157   :  { %v2293_v49 = vpop.f32.mrb[0].mxu0 }
 0x158   :  { %387 = vrot.lane.b32.xlu1 %v2293_v49, %s2572_s1  ;;  %v289_v50 = vpop.f32.mrb[1].mxu0 }
 0x159   :  { %309 = vrot.lane.b32.xlu0 %v289_v50, %s2572_s1 }
 0x177   :  { %v2784_v51 = vpop.f32.mrb[2].mxu0 }
 0x178   :  { %v2786_v52 = vpop.f32.mrb[3].mxu0 }
 0x179   :  { %464 = vrot.lane.b32.xlu1 %v2786_v52, %s2572_s1 }
 0x17d   :  { %541 = vrot.lane.b32.xlu1 %v2784_v51, %s2572_s1 }
 0x1ca   :  { %v388_v53 = vpop.permute.xlu1 %387 }
 0x1cb   :  { %2303 = vmatpush3.xpose.msk.msra.mxu1 %vm311_vm2, %v388_v53  ;;  %v310_v54 = vpop.permute.xlu0 %309 }
 0x1cc   :  { %2298 = vmatpush3.xpose.msk.msra.mxu0 %vm311_vm2, %v310_v54  ;;  %2307 = vmatprep.subr.mxu1 %v2570_v48 }
 0x1cd   :  { %2322 = vmatprep.subr.mxu0 %v2570_v48 }
 0x1ce   :  { %2305 = vmatmul.mubr.msk.f32.vlgmr.msra.gmra.mrb[0].mxu1 %vm311_vm2, %v2293_v49 }
 0x1cf   :  { %2300 = vmatmul.mubr.msk.f32.vlgmr.msra.gmra.mrb[4].mxu0 %vm311_vm2, %v289_v50  ;;  %2309 = vmatprep.mubr.msk.f32.mxu1 %vm2571_vm1, %v2570_v48 }
 0x1d0   :  { %2324 = vmatprep.mubr.msk.f32.mxu0 %vm2571_vm1, %v2570_v48 }
 0x1eb   :  { %v465_v55 = vpop.permute.xlu1 %464 }
 0x1ec   :  { %2308 = vmatpush3.xpose.msk.msra.mxu1 %vm311_vm2, %v465_v55 }
 0x1ed   :  { %2312 = vmatprep.subr.mxu1 %v2570_v48 }
 0x1ef   :  { %2310 = vmatmul.mubr.msk.f32.vlgmr.msra.gmra.mrb[2].mxu1 %vm311_vm2, %v2786_v52  ;;  %v542_v56 = vpop.permute.xlu1 %541 }
 0x1f0   :  { %2313 = vmatpush3.xpose.msk.msra.mxu1 %vm311_vm2, %v542_v56  ;;  %2314 = vmatprep.mubr.msk.f32.mxu1 %vm2571_vm1, %v2570_v48  ;;  %v1180_v56 = vld [vmem:[%s3023_s5] sm:$0xff] }
 0x1f1   :  { %2317 = vmatprep.subr.mxu1 %v2570_v48 }
 0x1f3   :  { %2315 = vmatmul.mubr.msk.f32.vlgmr.msra.gmra.mrb[4].mxu1 %vm311_vm2, %v2784_v51 }
 0x1f4   :  { %2319 = vmatprep.mubr.msk.f32.mxu1 %vm2571_vm1, %v2570_v48 }
 0x2a1   :  { %v459_v57 = vpop.f32.mrb[0].mxu1 }
 0x2a2   :  { %v618_v58 = vmul.f32 0.17677669, %v459_v57  ;;  %v382_v59 = vpop.f32.mrb[4].mxu0  ;;  %v2306_v60 = vpop.f32.mrb[1].mxu1  ;;  %v1181_v57 = vld [vmem:[%s3023_s5 + $0x8] sm:$0xff] }
 0x2a3   :  { %v617_v61 = vmul.f32 0.17677669, %v382_v59  ;;  %v2301_v62 = vpop.f32.mrb[5].mxu0  ;;  %v1075_v59 = vld [vmem:[%s3022_s4] sm:$0xff]  ;;  %v1076_v60 = vld [vmem:[%s3022_s4 + $0x8] sm:$0xff] }
 0x2a4   :  { %v625_v63 = vsel %vm621_vm3, %v618_v58, -inf  ;;  %v2465_v62 = vpack.c.bf16 %v1076_v60, %v1075_v59 }
 0x2a5   :  { %626 = vmax.xlane.f32.xlu0 %v625_v63  ;;  %v622_v0 = vsel %vm621_vm3, %v617_v61, -inf  ;;  %v1078_v63 = vld [vmem:[%s3022_s4 + $0x18] sm:$0xff] }
 0x2a6   :  { %623 = vmax.xlane.f32.xlu1 %v622_v0 }
 0x2c2   :  { %v536_v1 = vpop.f32.mrb[2].mxu1 }
 0x2c3   :  { %v619_v2 = vmul.f32 0.17677669, %v536_v1  ;;  %v2311_v3 = vpop.f32.mrb[3].mxu1  ;;  %v1079_v1 = vld [vmem:[%s3022_s4 + $0x20] sm:$0xff] }
 0x2c5   :  { %v628_v4 = vsel %vm621_vm3, %v619_v2, -inf }
 0x2c6   :  { %629 = vmax.xlane.f32.xlu0 %v628_v4  ;;  %v613_v5 = vpop.f32.mrb[4].mxu1  ;;  %v1182_v4 = vld [vmem:[%s3023_s5 + $0x10] sm:$0xff] }
 0x2c7   :  { %v620_v6 = vmul.f32 0.17677669, %v613_v5  ;;  %v2316_v7 = vpop.f32.mrb[5].mxu1  ;;  %v1183_v5 = vld [vmem:[%s3023_s5 + $0x18] sm:$0xff] }
 0x2c9   :  { %v631_v8 = vsel %vm621_vm3, %v620_v6, -inf }
 0x2ca   :  { %632 = vmax.xlane.f32.xlu1 %v631_v8 }
 0x2db   :  { %742 = vrot.lane.b32.xlu1 %v2293_v49, %s2573_s25  ;;  %v972_v49 = vld [vmem:[%s3021_s3 + $0x10] sm:$0xff] }
 0x2dc   :  { %666 = vrot.lane.b32.xlu0 %v289_v50, %s2573_s25  ;;  %v973_v50 = vld [vmem:[%s3021_s3 + $0x18] sm:$0xff] }
 0x2dd   :  { %v2461_v53 = vpack.c.bf16 %v973_v50, %v972_v49 }
 0x332   :  { %v627_v9 = vpop.xlane.xlu0 %626 }
 0x333   :  { %v635_v10 = vsub.f32 %v618_v58, %v627_v9  ;;  %v624_v11 = vpop.xlane.xlu1 %623  ;;  %v2481_v58 = vpack.c.bf16 %v1181_v57, %v1180_v56  ;;  %v2485_v9 = vpack.c.bf16 %v1183_v5, %v1182_v4 }
 0x334   :  { %v634_v12 = vsub.f32 %v617_v61, %v624_v11  ;;  %v1077_v61 = vld [vmem:[%s3022_s4 + $0x10] sm:$0xff] }
 0x335   :  { %v640_v13 = vmul.f32 1.442695, %v635_v10  ;;  %v2469_v0 = vpack.c.bf16 %v1078_v63, %v1077_v61 }
 0x336   :  { %v638_v14 = vmul.f32 1.442695, %v634_v12 }
 0x337   :  { %2508 = vpow2.f32 %v640_v13 }
 0x338   :  { %2510 = vpow2.f32 %v638_v14 }
 0x341   :  { %v2509_v15 = vpop.eup %2508 }
 0x342   :  { %v2511_v16 = vpop.eup %2510  ;;  %v649_v17 = vsel %vm621_vm3, %v2509_v15, 0.0 }
 0x343   :  { %650 = vadd.xlane.f32.xlu1 %v649_v17  ;;  %v646_v18 = vsel %vm621_vm3, %v2511_v16, 0.0 }
 0x344   :  { %647 = vadd.xlane.f32.xlu0 %v646_v18 }
 0x353   :  { %v630_v19 = vpop.xlane.xlu0 %629 }
 0x354   :  { %v636_v20 = vsub.f32 %v619_v2, %v630_v19  ;;  %v1080_v2 = vld [vmem:[%s3022_s4 + $0x28] sm:$0xff] }
 0x355   :  { %v2473_v3 = vpack.c.bf16 %v1080_v2, %v1079_v1 }
 0x356   :  { %v642_v21 = vmul.f32 1.442695, %v636_v20 }
 0x357   :  { %v633_v22 = vpop.xlane.xlu1 %632  ;;  %v667_v23 = vpop.permute.xlu0 %666 }
 0x358   :  { %2512 = vpow2.f32 %v642_v21  ;;  %v637_v24 = vsub.f32 %v620_v6, %v633_v22  ;;  %2318 = vmatpush3.msra.mxu1 %v667_v23 }
 0x359   :  { %2327 = vmatprep.subr.mxu1 %v2570_v48 }
 0x35a   :  { %v644_v25 = vmul.f32 1.442695, %v637_v24 }
 0x35b   :  { %v743_v26 = vpop.permute.xlu1 %742 }
 0x35c   :  { %2514 = vpow2.f32 %v644_v25  ;;  %2323 = vmatpush3.msra.mxu0 %v743_v26 }
 0x35d   :  { %2332 = vmatprep.subr.mxu0 %v2570_v48 }
 0x362   :  { %v2513_v27 = vpop.eup %2512 }
 0x363   :  { %v652_v28 = vsel %vm621_vm3, %v2513_v27, 0.0 }
 0x364   :  { %653 = vadd.xlane.f32.xlu0 %v652_v28 }
 0x366   :  { %v2515_v29 = vpop.eup %2514 }
 0x367   :  { %v655_v30 = vsel %vm621_vm3, %v2515_v29, 0.0 }
 0x368   :  { %656 = vadd.xlane.f32.xlu1 %v655_v30 }
 0x379   :  { %818 = vrot.lane.b32.xlu1 %v2786_v52, %s2573_s25 }
 0x37a   :  { %894 = vrot.lane.b32.xlu0 %v2784_v51, %s2573_s25 }
 0x3d0   :  { %v651_v31 = vpop.xlane.xlu1 %650 }
 0x3d1   :  { %2516 = vrcp.f32 %v651_v31  ;;  %v648_v32 = vpop.xlane.xlu0 %647 }
 0x3d2   :  { %2518 = vrcp.f32 %v648_v32 }
 0x3db   :  { %v2517_v33 = vpop.eup %2516 }
 0x3dc   :  { %v2519_v34 = vpop.eup %2518  ;;  %v663_v35 = vmul.f32 %v2517_v33, %v2509_v15  ;;  %v1081_v15 = vld [vmem:[%s3022_s4 + $0x30] sm:$0xff] }
 0x3dd   :  { %v662_v36 = vmul.f32 %v2519_v34, %v2511_v16  ;;  %v1082_v16 = vld [vmem:[%s3022_s4 + $0x38] sm:$0xff] }
 0x3de   :  { %2325 = vmatmul.mubr.msk.f32.vlgmr.msra.gmra.mrb[6].mxu0 %vm621_vm3, %v663_v35  ;;  %v2477_v17 = vpack.c.bf16 %v1082_v16, %v1081_v15 }
 0x3df   :  { %2320 = vmatmul.mubr.msk.f32.vlgmr.msra.gmra.mrb[6].mxu1 %vm621_vm3, %v662_v36  ;;  %2334 = vmatprep.mubr.msk.f32.mxu0 %vm2571_vm1, %v2570_v48 }
 0x3e0   :  { %2329 = vmatprep.mubr.msk.f32.mxu1 %vm2571_vm1, %v2570_v48 }
 0x3f1   :  { %v654_v37 = vpop.xlane.xlu0 %653 }
 0x3f2   :  { %2520 = vrcp.f32 %v654_v37 }
 0x3f5   :  { %v657_v40 = vpop.xlane.xlu1 %656  ;;  %v895_v41 = vpop.permute.xlu0 %894 }
 0x3f6   :  { %2522 = vrcp.f32 %v657_v40  ;;  %2333 = vmatpush3.msra.mxu0 %v895_v41 }
 0x3f7   :  { %2466 = vmatprep.subr.bf16.mxu0 %v2465_v62 }
 0x3f9   :  { %v819_v43 = vpop.permute.xlu1 %818 }
 0x3fa   :  { %2328 = vmatpush3.msra.mxu1 %v819_v43 }
 0x3fb   :  { %2458 = vmatprep.subr.bf16.mxu1 %v2457_v42 }
 0x3fc   :  { %v2521_v51 = vpop.eup %2520 }
 0x3fd   :  { %v664_v52 = vmul.f32 %v2521_v51, %v2513_v27 }
 0x3ff   :  { %2330 = vmatmul.mubr.msk.f32.vlgmr.msra.gmra.mrb[8].mxu1 %vm621_vm3, %v664_v52 }
 0x400   :  { %v2523_v54 = vpop.eup %2522  ;;  %2460 = vmatpush3.bf16.msra.mxu1 %v2457_v42 }
 0x401   :  { %v665_v55 = vmul.f32 %v2523_v54, %v2515_v29  ;;  %2462 = vmatprep.subr.bf16.mxu1 %v2461_v53 }
 0x403   :  { %2335 = vmatmul.mubr.msk.f32.vlgmr.msra.gmra.mrb[8].mxu0 %vm621_vm3, %v665_v55 }
 0x404   :  { %2464 = vmatpush3.bf16.msra.mxu1 %v2461_v53  ;;  %2468 = vmatpush3.bf16.msra.mxu0 %v2465_v62 }
 0x405   :  { %2482 = vmatprep.subr.bf16.mxu1 %v2481_v58  ;;  %2470 = vmatprep.subr.bf16.mxu0 %v2469_v0 }
 0x408   :  { %2472 = vmatpush3.bf16.msra.mxu0 %v2469_v0 }
 0x409   :  { %2474 = vmatprep.subr.bf16.mxu0 %v2473_v3 }
 0x40c   :  { %2476 = vmatpush3.bf16.msra.mxu0 %v2473_v3 }
 0x40d   :  { %2478 = vmatprep.subr.bf16.mxu0 %v2477_v17 }
 0x410   :  { %2480 = vmatpush3.bf16.msra.mxu0 %v2477_v17  ;;  %v1925_v17 = vld [vmem:[%s3024_s6] sm:$0xff] }
 0x411   :  { %2392 = vmatprep.subr.mxu0 %v2570_v48 }
 0x4b1   :  { %v814_v6 = vpop.f32.mrb[6].mxu0 }
 0x4b2   :  { %v738_v7 = vpop.f32.mrb[6].mxu1  ;;  %v2326_v8 = vpop.f32.mrb[7].mxu0 }
 0x4b3   :  { %v2321_v10 = vpop.f32.mrb[7].mxu1  ;;  %2345 = vmatprep.mubr.msk.f32.mxu1 %vm311_vm2, %v738_v7 }
 0x4b4   :  { %2346 = vmatmul.mubr.msk.f32.vlgmr.msra.gmra.mrb[10].mxu1 %vm311_vm2, %v814_v6 }
 0x4b5   :  { %2484 = vmatpush3.bf16.msra.mxu1 %v2481_v58 }
 0x4b6   :  { %2486 = vmatprep.subr.bf16.mxu1 %v2485_v9 }
 0x4b9   :  { %2488 = vmatpush3.bf16.msra.mxu1 %v2485_v9 }
 0x4ba   :  { %2387 = vmatprep.subr.mxu1 %v2570_v48 }
 0x4d2   :  { %v890_v11 = vpop.f32.mrb[8].mxu1 }
 0x4d3   :  { %v2331_v12 = vpop.f32.mrb[9].mxu1  ;;  %2348 = vmatprep.mubr.msk.f32.mxu1 %vm311_vm2, %v890_v11 }
 0x4d6   :  { %v966_v13 = vpop.f32.mrb[8].mxu0 }
 0x4d7   :  { %v2336_v14 = vpop.f32.mrb[9].mxu0  ;;  %2349 = vmatmul.mubr.msk.f32.gmra.mrb[12].mxu1 %vm311_vm2, %v966_v13 }
 0x4d8   :  { %2381 = vmatprep.mubr.msk.f32.mxu1 %vm311_vm2, %v890_v11 }
 0x4db   :  { %2382 = vmatmul.mubr.msk.f32.vlgmr.msra.gmra.mrb[14].mxu1 %vm311_vm2, %v966_v13 }
 0x4dc   :  { %2384 = vmatprep.mubr.msk.f32.mxu1 %vm311_vm2, %v738_v7 }
 0x4df   :  { %2385 = vmatmul.mubr.msk.f32.gmra.mrb[16].mxu1 %vm311_vm2, %v814_v6 }
 0x4e0   :  { %2389 = vmatprep.mubr.msk.f32.mxu1 %vm2571_vm1, %v2570_v48 }
 0x587   :  { %v2347_v18 = vpop.f32.mrb[10].mxu1 }
 0x588   :  { %v1052_v19 = vpop.f32.mrb[11].mxu1  ;;  %v1072_v21 = vadd.f32 %v2347_v18, %v2762_v45  ;;  %v1926_v18 = vld [vmem:[%s3024_s6 + $0x8] sm:$0xff] }
 0x589   :  { %v1071_v20 = vadd.f32 %v1052_v19, %v2760_v44 }
 0x58b   :  { %2367 = vmatprep.mubr.msk.f32.mxu0 %vm210_vm0, %v1071_v20 }
 0x58c   :  { %2368 = vmatmul.mubr.msk.f32.vlgmr.msra.gmra.mrb[10].mxu0 %vm210_vm0, %v1072_v21 }
 0x5aa   :  { %v2350_v22 = vpop.f32.mrb[12].mxu1 }
 0x5ab   :  { %v1074_v23 = vadd.f32 %v2350_v22, %v2770_v47  ;;  %v1062_v24 = vpop.f32.mrb[13].mxu1 }
 0x5ac   :  { %v1073_v25 = vadd.f32 %v1062_v24, %v2768_v46  ;;  %v1928_v24 = vld [vmem:[%s3024_s6 + $0x18] sm:$0xff] }
 0x5ad   :  { %v2904_v26 = vadd.f32 %v1074_v23, %v1072_v21  ;;  %v2489_v21 = vpack.c.bf16 %v1926_v18, %v1925_v17 }
 0x5ae   :  { %2370 = vmatprep.mubr.msk.f32.mxu0 %vm210_vm0, %v1073_v25  ;;  %v2383_v27 = vpop.f32.mrb[14].mxu1  ;;  %v2907_v28 = vadd.f32 %v1073_v25, %v1071_v20 }
 0x5af   :  { %2371 = vmatmul.mubr.msk.f32.gmra.mrb[12].mxu0 %vm210_vm0, %v1074_v23  ;;  %v1250_v44 = vpop.f32.mrb[15].mxu1 }
 0x5b0   :  { %2393 = vmatpush3.xpose.msk.msra.mxu0 %vm311_vm2, %v2383_v27  ;;  %2388 = vmatpush3.xpose.msk.msra.mxu1 %vm311_vm2, %v1250_v44 }
 0x5b1   :  { %2394 = vmatprep.mubr.msk.f32.mxu0 %vm2571_vm1, %v2570_v48  ;;  %2402 = vmatprep.subr.mxu0 %v2570_v48 }
 0x5b2   :  { %v2915_v45 = vpop.f32.mrb[16].mxu1  ;;  %2397 = vmatprep.subr.mxu1 %v2570_v48 }
 0x5b3   :  { %v2918_v46 = vpop.f32.mrb[17].mxu1 }
 0x65f   :  { %v2369_v47 = vpop.f32.mrb[10].mxu0 }
 0x660   :  { %v1161_v29 = vpop.f32.mrb[11].mxu0  ;;  %2395 = vmatmul.mubr.msk.f32.vlgmr.msra.gmra.mrb[14].mxu0 %vm311_vm2, %v2369_v47 }
 0x661   :  { %2403 = vmatpush3.xpose.msk.msra.mxu0 %vm311_vm2, %v2915_v45  ;;  %2390 = vmatmul.mubr.msk.f32.vlgmr.msra.gmra.mrb[18].mxu1 %vm311_vm2, %v1161_v29 }
 0x662   :  { %2398 = vmatpush3.xpose.msk.msra.mxu1 %vm311_vm2, %v2918_v46  ;;  %2404 = vmatprep.mubr.msk.f32.mxu0 %vm2571_vm1, %v2570_v48 }
 0x663   :  { %2399 = vmatprep.mubr.msk.f32.mxu1 %vm2571_vm1, %v2570_v48  ;;  %2412 = vmatprep.subr.mxu0 %v2570_v48 }
 0x664   :  { %2407 = vmatprep.subr.mxu1 %v2570_v48 }
 0x682   :  { %v2372_v30 = vpop.f32.mrb[12].mxu0 }
 0x683   :  { %v1171_v31 = vpop.f32.mrb[13].mxu0  ;;  %2405 = vmatmul.mubr.msk.f32.vlgmr.msra.gmra.mrb[16].mxu0 %vm311_vm2, %v2372_v30 }
 0x684   :  { %2400 = vmatmul.mubr.msk.f32.vlgmr.msra.gmra.mrb[20].mxu1 %vm311_vm2, %v1171_v31  ;;  %2414 = vmatprep.mubr.msk.f32.mxu0 %vm2571_vm1, %v2570_v48 }
 0x685   :  { %2409 = vmatprep.mubr.msk.f32.mxu1 %vm2571_vm1, %v2570_v48 }
 0x733   :  { %v1417_v32 = vpop.f32.mrb[14].mxu0 }
 0x734   :  { %v1574_v33 = vmul.f32 0.17677669, %v1417_v32  ;;  %v1341_v34 = vpop.f32.mrb[18].mxu1  ;;  %v2396_v35 = vpop.f32.mrb[15].mxu0 }
 0x735   :  { %v1573_v36 = vmul.f32 0.17677669, %v1341_v34  ;;  %v2391_v37 = vpop.f32.mrb[19].mxu1 }
 0x736   :  { %v1580_v38 = vsel %vm621_vm3, %v1574_v33, -inf }
 0x737   :  { %1581 = vmax.xlane.f32.xlu0 %v1580_v38  ;;  %v1577_v39 = vsel %vm621_vm3, %v1573_v36, -inf }
 0x738   :  { %1578 = vmax.xlane.f32.xlu1 %v1577_v39 }
 0x756   :  { %v1569_v40 = vpop.f32.mrb[16].mxu0 }
 0x757   :  { %v1576_v41 = vmul.f32 0.17677669, %v1569_v40  ;;  %v1493_v42 = vpop.f32.mrb[20].mxu1  ;;  %v2406_v43 = vpop.f32.mrb[17].mxu0 }
 0x758   :  { %v1575_v49 = vmul.f32 0.17677669, %v1493_v42  ;;  %v2401_v50 = vpop.f32.mrb[21].mxu1 }
 0x759   :  { %v1586_v51 = vsel %vm621_vm3, %v1576_v41, -inf }
 0x75a   :  { %1587 = vmax.xlane.f32.xlu1 %v1586_v51  ;;  %v1583_v52 = vsel %vm621_vm3, %v1575_v49, -inf }
 0x75b   :  { %1584 = vmax.xlane.f32.xlu0 %v1583_v52 }
 0x76b   :  { %1697 = vrot.lane.b32.xlu1 %v2383_v27, %s2572_s1 }
 0x771   :  { %1621 = vrot.lane.b32.xlu0 %v1250_v44, %s2572_s1 }
 0x7c4   :  { %v1582_v53 = vpop.xlane.xlu0 %1581 }
 0x7c5   :  { %v1590_v54 = vsub.f32 %v1574_v33, %v1582_v53  ;;  %v1579_v55 = vpop.xlane.xlu1 %1578 }
 0x7c6   :  { %v1589_v56 = vsub.f32 %v1573_v36, %v1579_v55 }
 0x7c7   :  { %v1595_v57 = vmul.f32 1.442695, %v1590_v54 }
 0x7c8   :  { %v1593_v58 = vmul.f32 1.442695, %v1589_v56 }
 0x7c9   :  { %2524 = vpow2.f32 %v1595_v57 }
 0x7ca   :  { %2526 = vpow2.f32 %v1593_v58 }
 0x7d3   :  { %v2525_v59 = vpop.eup %2524 }
 0x7d4   :  { %v2527_v60 = vpop.eup %2526  ;;  %v1604_v61 = vsel %vm621_vm3, %v2525_v59, 0.0 }
 0x7d5   :  { %1605 = vadd.xlane.f32.xlu1 %v1604_v61  ;;  %v1601_v62 = vsel %vm621_vm3, %v2527_v60, 0.0 }
 0x7d6   :  { %1602 = vadd.xlane.f32.xlu0 %v1601_v62 }
 0x7e7   :  { %v1588_v63 = vpop.xlane.xlu1 %1587 }
 0x7e8   :  { %v1592_v0 = vsub.f32 %v1576_v41, %v1588_v63  ;;  %v1585_v1 = vpop.xlane.xlu0 %1584 }
 0x7e9   :  { %v1591_v2 = vsub.f32 %v1575_v49, %v1585_v1  ;;  %v2061_v1 = vld [vmem:[%s3027_s9] sm:$0xff] }
 0x7ea   :  { %v1599_v3 = vmul.f32 1.442695, %v1592_v0 }
 0x7eb   :  { %v1597_v4 = vmul.f32 1.442695, %v1591_v2  ;;  %v1698_v5 = vpop.permute.xlu1 %1697 }
 0x7ec   :  { %2528 = vpow2.f32 %v1599_v3  ;;  %v1622_v6 = vpop.permute.xlu0 %1621  ;;  %2413 = vmatpush3.msra.mxu0 %v1698_v5 }
 0x7ed   :  { %2530 = vpow2.f32 %v1597_v4  ;;  %2408 = vmatpush3.msra.mxu1 %v1622_v6  ;;  %2422 = vmatprep.subr.mxu0 %v2570_v48  ;;  %v2089_v6 = vld [vmem:[%s3028_s10] sm:$0xff]  ;;  %s2574_s10 = smov [#allocation2]  }
 0x7ee   :  { %2417 = vmatprep.subr.mxu1 %v2570_v48 }
 0x7f6   :  { %v2529_v7 = vpop.eup %2528 }
 0x7f7   :  { %v2531_v8 = vpop.eup %2530  ;;  %v1610_v9 = vsel %vm621_vm3, %v2529_v7, 0.0 }
 0x7f8   :  { %1611 = vadd.xlane.f32.xlu1 %v1610_v9  ;;  %v1607_v10 = vsel %vm621_vm3, %v2531_v8, 0.0 }
 0x7f9   :  { %1608 = vadd.xlane.f32.xlu0 %v1607_v10 }
 0x809   :  { %1773 = vrot.lane.b32.xlu1 %v2918_v46, %s2572_s1 }
 0x80f   :  { %1849 = vrot.lane.b32.xlu0 %v2915_v45, %s2572_s1 }
 0x862   :  { %v1606_v11 = vpop.xlane.xlu1 %1605 }
 0x863   :  { %2532 = vrcp.f32 %v1606_v11  ;;  %v1603_v12 = vpop.xlane.xlu0 %1602 }
 0x864   :  { %2534 = vrcp.f32 %v1603_v12 }
 0x86d   :  { %v2533_v13 = vpop.eup %2532 }
 0x86e   :  { %v2535_v14 = vpop.eup %2534  ;;  %v1618_v15 = vmul.f32 %v2533_v13, %v2525_v59 }
 0x86f   :  { %v1617_v16 = vmul.f32 %v2535_v14, %v2527_v60  ;;  %v2052_v60 = vld [vmem:[%s3026_s8] sm:$0xff] }
 0x870   :  { %2415 = vmatmul.mubr.msk.f32.vlgmr.msra.gmra.mrb[18].mxu0 %vm621_vm3, %v1618_v15  ;;  %v2072_v15 = vlaneseq }
 0x871   :  { %2410 = vmatmul.mubr.msk.f32.vlgmr.msra.gmra.mrb[22].mxu1 %vm621_vm3, %v1617_v16  ;;  %2424 = vmatprep.mubr.msk.f32.mxu0 %vm2571_vm1, %v2570_v48 }
 0x872   :  { %2419 = vmatprep.mubr.msk.f32.mxu1 %vm2571_vm1, %v2570_v48  ;;  %v1927_v48 = vld [vmem:[%s3024_s6 + $0x10] sm:$0xff]  ;;  %v2073_v16 = vand.u32 127, %v2072_v15  ;;  %v2075_v17 = vshrl.u32 %v2072_v15, 7 }
 0x873   :  { %v2493_v46 = vpack.c.bf16 %v1928_v24, %v1927_v48 }
 0x874   :  { %v2076_v18 = vsub.s32 %v2073_v16, %v2075_v17 }
 0x885   :  { %v1612_v19 = vpop.xlane.xlu1 %1611 }
 0x886   :  { %2536 = vrcp.f32 %v1612_v19  ;;  %v1609_v20 = vpop.xlane.xlu0 %1608 }
 0x887   :  { %2538 = vrcp.f32 %v1609_v20 }
 0x889   :  { %v1774_v22 = vpop.permute.xlu1 %1773 }
 0x88a   :  { %v1850_v23 = vpop.permute.xlu0 %1849  ;;  %2418 = vmatpush3.msra.mxu1 %v1774_v22 }
 0x88b   :  { %2423 = vmatpush3.msra.mxu0 %v1850_v23  ;;  %2490 = vmatprep.subr.bf16.mxu1 %v2489_v21 }
 0x890   :  { %v2537_v25 = vpop.eup %2536 }
 0x891   :  { %v2539_v27 = vpop.eup %2538  ;;  %v1620_v44 = vmul.f32 %v2537_v25, %v2529_v7 }
 0x892   :  { %v1619_v45 = vmul.f32 %v2539_v27, %v2531_v8 }
 0x893   :  { %2425 = vmatmul.mubr.msk.f32.vlgmr.msra.gmra.mrb[20].mxu0 %vm621_vm3, %v1620_v44 }
 0x894   :  { %2420 = vmatmul.mubr.msk.f32.vlgmr.msra.gmra.mrb[24].mxu1 %vm621_vm3, %v1619_v45 }
 0x895   :  { %2492 = vmatpush3.bf16.msra.mxu1 %v2489_v21 }
 0x896   :  { %2494 = vmatprep.subr.bf16.mxu1 %v2493_v46 }
 0x899   :  { %2496 = vmatpush3.bf16.msra.mxu1 %v2493_v46 }
 0x943   :  { %v1769_v47 = vpop.f32.mrb[18].mxu0 }
 0x944   :  { %v1693_v29 = vpop.f32.mrb[22].mxu1  ;;  %v2416_v30 = vpop.f32.mrb[19].mxu0 }
 0x945   :  { %v2411_v31 = vpop.f32.mrb[23].mxu1  ;;  %2435 = vmatprep.mubr.msk.f32.mxu1 %vm311_vm2, %v1693_v29 }
 0x946   :  { %2436 = vmatmul.mubr.msk.f32.vlgmr.msra.gmra.mrb[26].mxu1 %vm311_vm2, %v1769_v47  ;;  %v2194_v47 = vld [vmem:[%s3029_s11] ss:$0 sm:$0xff]  ;;  %s2142_s11 = sshll.u32 %s2574_s10, 4  ;;  %s2143_s11 = int_to_ptr.vmem [resolvable:$true] %s2142_s11 }
 0x947   :  { %s2546_s27 = scalar_lea.vmem %s2143_s11, 32  ;;  %p2551_p1 = scmp.lt.s32.totalorder %s2143_s11, %s2143_s11 }
 0x948   :  { %p2547_p0 = scmp.ne.s32.totalorder %s2143_s11, %s2546_s27  ;;  %p2552_p2 = scmp.lt.s32.totalorder %s2546_s27, %s2546_s27 }
 0x94a   :  { %p2553_p3 = por %p2552_p2, %p2551_p1 }
 0x94c   :  { %p2554_p4 = pnand %p2553_p3, %p2547_p0 }
 0x966   :  { %v1921_v32 = vpop.f32.mrb[20].mxu0 }
 0x967   :  { %v1845_v33 = vpop.f32.mrb[24].mxu1  ;;  %v2426_v34 = vpop.f32.mrb[21].mxu0 }
 0x968   :  { %v2421_v35 = vpop.f32.mrb[25].mxu1  ;;  %2438 = vmatprep.mubr.msk.f32.mxu1 %vm311_vm2, %v1845_v33 }
 0x969   :  { %2439 = vmatmul.mubr.msk.f32.gmra.mrb[26].mxu1 %vm311_vm2, %v1921_v32 }
 0xa3c   :  { %v2440_v36 = vpop.f32.mrb[26].mxu1 }
 0xa3d   :  { %v2498_v37 = vadd.f32 %v2904_v26, %v2440_v36  ;;  %v2017_v38 = vpop.f32.mrb[27].mxu1 }
 0xa3e   :  { %v2500_v39 = vadd.f32 %v2907_v28, %v2017_v38  ;;  %v2049_v28 = vld [vmem:[%s3025_s7] sm:$0xff] }
 0xa3f   :  { %v2033_v40 = vsel %vm210_vm0, %v2498_v37, 0.0 }
 0xa40   :  { %v2032_v41 = vsel %vm210_vm0, %v2500_v39, 0.0 }
 0xa41   :  { %v2034_v42 = vadd.f32 %v2033_v40, %v2032_v41 }
 0xa43   :  { %v2036_v43 = vmul.f32 0.5, %v2034_v42 }
 0xa45   :  { %v2037_v49 = vsub.f32 %v2500_v39, %v2036_v43  ;;  %v2038_v50 = vsub.f32 %v2498_v37, %v2036_v43 }
 0xa47   :  { %v2039_v51 = vmul.f32 %v2037_v49, %v2037_v49  ;;  %v2040_v52 = vmul.f32 %v2038_v50, %v2038_v50 }
 0xa49   :  { %v2041_v53 = vsel %vm210_vm0, %v2039_v51, 0.0  ;;  %v2042_v54 = vsel %vm210_vm0, %v2040_v52, 0.0 }
 0xa4a   :  { %v2043_v55 = vadd.f32 %v2042_v54, %v2041_v53 }
 0xa4c   :  { %v2044_v56 = vmul.f32 0.5, %v2043_v55 }
 0xa4e   :  { %v2045_v26 = vadd.f32 1e-05, %v2044_v56 }
 0xa50   :  { %2540 = vrsqrt.f32 %v2045_v26 }
 0xa5a   :  { %v2541_v57 = vpop.eup %2540 }
 0xa5b   :  { %v2047_v58 = vmul.f32 %v2541_v57, %v2037_v49  ;;  %v2048_v59 = vmul.f32 %v2541_v57, %v2038_v50 }
 0xa5d   :  { %v2050_v61 = vmul.f32 %v2049_v28, %v2047_v58  ;;  %v2051_v62 = vmul.f32 %v2049_v28, %v2048_v59 }
 0xa5f   :  { %v2054_v63 = vadd.f32 %v2052_v60, %v2051_v62  ;;  %v2053_v0 = vadd.f32 %v2052_v60, %v2050_v61 }
 0xa61   :  { %vm2056_vm4 = vcmp.ge.f32.partialorder %v2054_v63, 0.0  ;;  %v2058_v2 = vmul.f32 0.01, %v2054_v63  ;;  %vm2055_vm5 = vcmp.ge.f32.partialorder %v2053_v0, 0.0  ;;  %v2057_v3 = vmul.f32 0.01, %v2053_v0 }
 0xa63   :  { %v2060_v4 = vsel %vm2056_vm4, %v2054_v63, %v2058_v2  ;;  %v2059_v5 = vsel %vm2055_vm5, %v2053_v0, %v2057_v3 }
 0xa64   :  { %v2063_v7 = vmul.f32 %v2061_v1, %v2060_v4  ;;  %v2062_v8 = vmul.f32 %v2061_v1, %v2059_v5  ;;  %v2090_v11 = vmul.f32 %v2089_v6, %v2059_v5  ;;  %v2091_v12 = vmul.f32 %v2089_v6, %v2060_v4 }
 0xa66   :  { %v2067_v9 = vsel %vm210_vm0, %v2063_v7, 0.0  ;;  %v2064_v10 = vsel %vm210_vm0, %v2062_v8, 0.0  ;;  %v2092_v13 = vsel %vm210_vm0, %v2090_v11, 0.0  ;;  %v2095_v14 = vsel %vm210_vm0, %v2091_v12, 0.0 }
 0xa67   :  { %2068 = vadd.xlane.f32.xlu0 %v2067_v9  ;;  %2065 = vadd.xlane.f32.xlu1 %v2064_v10 }
 0xa6b   :  { %2093 = vadd.xlane.f32.xlu0 %v2092_v13  ;;  %2096 = vadd.xlane.f32.xlu1 %v2095_v14 }
 0xaf4   :  { %v2069_v19 = vpop.xlane.xlu0 %2068  ;;  %v2066_v20 = vpop.xlane.xlu1 %2065 }
 0xaf5   :  { %v2081_v21 = vrot.slane %v2069_v19, %v2076_v18  ;;  %v2077_v22 = vrot.slane %v2066_v20, %v2076_v18 }
 0xaf7   :  { %v2083_v23 = vsel %vm2082_vm6, %v2081_v21, %v2077_v22 }
 0xaf8   :  { %v2094_v48 = vpop.xlane.xlu0 %2093  ;;  %v2097_v24 = vpop.xlane.xlu1 %2096  ;;  %v2086_v25 = vsel %vm2085_vm7, %v2083_v23, 0.0 }
 0xaf9   :  { %v2103_v27 = vrot.slane %v2094_v48, %v2076_v18  ;;  %v2107_v44 = vrot.slane %v2097_v24, %v2076_v18  ;;  %2087 = vadd.xlane.f32.xlu0 %v2086_v25 }
 0xafb   :  { %v2108_v45 = vsel %vm2082_vm6, %v2107_v44, %v2103_v27 }
 0xafc   :  { %v2110_v46 = vsel %vm2085_vm7, %v2108_v45, 0.0 }
 0xafd   :  { %2111 = vadd.xlane.f32.xlu1 %v2110_v46 }
 0xb86   :  { %v2088_v29 = vpop.xlane.xlu0 %2087 }
 0xb8a   :  { %v2112_v30 = vpop.xlane.xlu1 %2111 }
 0xb8b   :  { %v2114_v31 = vsel %vm2113_vm8, %v2088_v29, %v2112_v30 }
 0xb8c   :  { %v2122_v32 = vadd.f32 %v2194_v47, %v2114_v31 }
 0xb8e   :  { %v2124_v33 = vsel %vm2123_vm9, %v2122_v32, -inf }
 0xb8f   :  { %2125 = vmax.xlane.f32.xlu0 %v2124_v33 }
 0xc1c   :  { %v2126_v34 = vpop.xlane.xlu0 %2125 }
 0xc1d   :  { %v2127_v35 = vsub.f32 %v2122_v32, %v2126_v34 }
 0xc1f   :  { %v2128_v36 = vmul.f32 1.442695, %v2127_v35 }
 0xc21   :  { %2542 = vpow2.f32 %v2128_v36 }
 0xc2b   :  { %v2543_v37 = vpop.eup %2542 }
 0xc2c   :  { %v2130_v38 = vsel %vm2123_vm9, %v2543_v37, 0.0 }
 0xc2d   :  { %2131 = vadd.xlane.f32.xlu1 %v2130_v38 }
 0xcba   :  { %v2132_v39 = vpop.xlane.xlu1 %2131 }
 0xcbb   :  { %2544 = vrcp.f32 %v2132_v39 }
 0xcc5   :  { %v2545_v40 = vpop.eup %2544 }
 0xcc6   :  { %v2134_v41 = vmul.f32 %v2545_v40, %v2543_v37 }
 0xcc8   :  { %2135 = vst.msk [vmem:[#allocation2] sm:$0x3] %vm2123_vm9, %v2134_v41 }
 0xcc9   :  { %2557 = shalt.err (!%p2554_p4)
}
 0xcca   :  { %s2558_s29 = scalar_lea.hbm %s3030_s12, 32 }
 0xccb   :  { %p2559_p5 = scmp.ne.s32.totalorder %s3030_s12, %s2558_s29  ;;  %p2562_p6 = scmp.lt.u32.totalorder %s2558_s29, %s3030_s12 }
 0xccd   :  { %p2564_p7 = pnand %p2562_p6, %p2559_p5 }
 0xccf   :  { %2567 = shalt.err (!%p2564_p7)
}
 0xcd0   :  { %2145 = dma.vmem_to_hbm [thread:$0]  %s2143_s11, 32, %s3030_s12, [#allocation3]  }
 0xcd1   :  { %2568 = dma.done.wait [#allocation3], 32  }
 0xcd2   :  { %2569 = vsyncadd [#allocation3], 4294967264 }
 0xcd3   :  { %2149 = vsyncpa [#allocation3], 1 }

</bundles_post_ra>
